<compile_context>
chip_gen: v5e
topology: v5e:2x2
jax: 0.10.0
libtpu: 0.0.40
codegen_flags: <defaults>
</compile_context>

<pallas_src>
import jax
import jax.numpy as jnp
from jax import lax
from jax.experimental import pallas as pl
from jax.experimental.pallas import tpu as pltpu

NEG_SLOPE = 0.01  # torch.nn.LeakyReLU default


def _leaky_relu(x):
    return jnp.where(x > 0, x, NEG_SLOPE * x)


def _round_up(x, m):
    return ((x + m - 1) // m) * m


def _choose_tile(batch, block_b):
    """Pick (num_blocks, rows_per_block) for the batch axis.

    - B <= 16: single block exactly covering the array (block dim == array dim,
      always a legal block shape).
    - B > 16: at least two grid steps (v7x megacore needs >= 2 parallel steps),
      balanced 16-row-aligned tiles capped at `block_b` to minimize padded rows.
    """
    if batch <= 16:
        return 1, batch
    nb = max(pl.cdiv(batch, block_b), 2)
    bm = _round_up(pl.cdiv(batch, nb), 16)
    nb = pl.cdiv(batch, bm)
    return nb, bm


def fc_head_kernel(x_ref, w1_ref, b1_ref, w2_ref, b2_ref, w3_ref, b3_ref, o_ref):
    # Dropout(0.5): eval-mode identity (checkpoint / self.eval() semantics).
    x = x_ref[...].astype(jnp.bfloat16)                             # (bm, 768)

    # Linear(768, 256) + LeakyReLU — bf16 MXU matmul, f32 accumulation.
    h1 = jnp.dot(x, w1_ref[...], preferred_element_type=jnp.float32) + b1_ref[...]
    h1 = _leaky_relu(h1)                                            # (bm, 256) f32

    # Linear(256, 16) + LeakyReLU — bf16 MXU matmul, f32 accumulation.
    h2 = jnp.dot(h1.astype(jnp.bfloat16), w2_ref[...],
                 preferred_element_type=jnp.float32) + b2_ref[...]
    h2 = _leaky_relu(h2)                                            # (bm, 16) f32

    # Linear(16, 1) + Tanh — computed as an NT matmul so the per-row scalar
    # lands lane-major:  (1,16) x (bm,16)^T -> (1,bm).  This makes the output
    # lane-dense (unmasked stores, contiguous writeback DMA).
    h3 = lax.dot_general(w3_ref[...], h2,
                         (((1,), (1,)), ((), ())),
                         preferred_element_type=jnp.float32) + b3_ref[...]
    o_ref[0] = jnp.tanh(h3)                                         # (1, bm) f32


def sentiment_fc_head(embeddings, params, *, block_b=1024):
    """Pallas implementation of SentimentPLModel.fc applied to pooled embeddings.

    embeddings: f32[B, 768]  (the RoBERTa pooler_output)
    params: w1 [768,256], b1 [1,256], w2 [256,16], b2 [1,16], w3 [16,1], b3 [1,1]
            (weights stored as [in, out], i.e. transposed vs. PyTorch)
    returns: f32[B, 1]
    """
    B, D = embeddings.shape
    assert D == 768

    nb, bm = _choose_tile(B, block_b)

    # Embeddings stay f32 in HBM; the bf16 cast happens in-kernel on the tile
    # (avoids an extra full-array cast/pad pass over HBM in the wrapper).
    x = embeddings

    w1 = params["w1"].astype(jnp.bfloat16)                 # (768, 256)
    b1 = params["b1"].astype(jnp.float32)                  # (1, 256)
    w2 = params["w2"].astype(jnp.bfloat16)                 # (256, 16)
    b2 = params["b2"].astype(jnp.float32)                  # (1, 16)
    w3 = params["w3"].astype(jnp.float32).reshape(1, 16)   # (1, 16) row
    b3 = params["b3"].astype(jnp.float32).reshape(1, 1)    # (1, 1)

    # Weights/biases are small -> full-array blocks, constant index_map
    # (no re-DMA across grid steps).
    def full(arr):
        return pl.BlockSpec(arr.shape, lambda i: (0,) * arr.ndim)

    out = pl.pallas_call(
        fc_head_kernel,
        out_shape=jax.ShapeDtypeStruct((nb, 1, bm), jnp.float32),
        grid_spec=pltpu.PrefetchScalarGridSpec(
            num_scalar_prefetch=0,
            grid=(nb,),
            in_specs=[
                pl.BlockSpec((bm, 768), lambda i: (i, 0)),   # embeddings tile
                full(w1), full(b1),
                full(w2), full(b2),
                full(w3), full(b3),
            ],
            out_specs=pl.BlockSpec((1, 1, bm), lambda i: (i, 0, 0)),
        ),
        compiler_params=pltpu.CompilerParams(
            dimension_semantics=("parallel",),
            vmem_limit_bytes=32 * 1024 * 1024,
        ),
    )(x, w1, b1, w2, b2, w3, b3)

    # Lane-dense (nb, 1, bm) layout -> (B, 1); ragged/garbage tail rows dropped.
    return out.reshape(nb * bm, 1)[:B]


def init_params(key):
    """Deterministic synthetic init matching nn.Linear shapes (stored as [in, out])."""
    k1, k2, k3, k4, k5, k6 = jax.random.split(key, 6)

    def linear_init(kw, kb, fan_in, fan_out):
        bound = 1.0 / jnp.sqrt(fan_in)
        w = jax.random.uniform(kw, (fan_in, fan_out), jnp.float32, -bound, bound)
        b = jax.random.uniform(kb, (1, fan_out), jnp.float32, -bound, bound)
        return w, b

    w1, b1 = linear_init(k1, k2, 768, 256)
    w2, b2 = linear_init(k3, k4, 256, 16)
    w3, b3 = linear_init(k5, k6, 16, 1)
    return {"w1": w1, "b1": b1, "w2": w2, "b2": b2, "w3": w3, "b3": b3}


def reference_fc_head(embeddings, params, *, bf16_matmuls=True):
    """Pure-JAX reference of the FC head (eval-mode dropout = identity)."""
    if bf16_matmuls:
        h = jnp.dot(embeddings.astype(jnp.bfloat16),
                    params["w1"].astype(jnp.bfloat16),
                    preferred_element_type=jnp.float32) + params["b1"]
        h = _leaky_relu(h)
        h = jnp.dot(h.astype(jnp.bfloat16),
                    params["w2"].astype(jnp.bfloat16),
                    preferred_element_type=jnp.float32) + params["b2"]
        h = _leaky_relu(h)
    else:
        h = _leaky_relu(embeddings @ params["w1"] + params["b1"])
        h = _leaky_relu(h @ params["w2"] + params["b2"])
    return jnp.tanh(h @ params["w3"] + params["b3"])


if __name__ == "__main__":
    key = jax.random.PRNGKey(0)
    k_emb, k_par = jax.random.split(key)

    B = 8  # small batch of sentences
    # Synthetic stand-in for RobertaModel(...)['pooler_output'].float()
    embeddings = jax.random.normal(k_emb, (B, 768), jnp.float32)
    params = init_params(k_par)

    out = jax.block_until_ready(sentiment_fc_head(embeddings, params))
    assert out.shape == (B, 1)

    ref_matched = reference_fc_head(embeddings, params, bf16_matmuls=True)
    ref_f32 = reference_fc_head(embeddings, params, bf16_matmuls=False)
    assert jnp.allclose(out, ref_matched, atol=1e-2, rtol=1e-2)
    assert jnp.allclose(out, ref_f32, atol=5e-2, rtol=5e-2)

    print("KERNEL_OK")
</pallas_src>

<mosaic_0001>
module attributes {stable_mosaic.version = 11 : i64} {
  func.func @fc_head_kernel(%arg0: i32, %arg1: memref<8x768xf32, #tpu.memory_space<vmem>>, %arg2: memref<768x256xbf16, #tpu.memory_space<vmem>>, %arg3: memref<1x256xf32, #tpu.memory_space<vmem>>, %arg4: memref<256x16xbf16, #tpu.memory_space<vmem>>, %arg5: memref<1x16xf32, #tpu.memory_space<vmem>>, %arg6: memref<1x16xf32, #tpu.memory_space<vmem>>, %arg7: memref<1x1xf32, #tpu.memory_space<vmem>>, %arg8: memref<1x1x8xf32, #tpu.memory_space<vmem>>) attributes {dimension_semantics = [#tpu.dimension_semantics<parallel>], iteration_bounds = array<i64: 1>, scalar_prefetch = 0 : i64, scratch_operands = 0 : i64, tpu.core_type = #tpu.core_type<tc>, window_params = [{transform_indices = @transform_0, window_bounds = array<i64: 8, 768>}, {pipeline_mode = #tpu.pipeline_mode<synchronous>, transform_indices = @transform_1, window_bounds = array<i64: 768, 256>}, {pipeline_mode = #tpu.pipeline_mode<synchronous>, transform_indices = @transform_2, window_bounds = array<i64: 1, 256>}, {pipeline_mode = #tpu.pipeline_mode<synchronous>, transform_indices = @transform_3, window_bounds = array<i64: 256, 16>}, {pipeline_mode = #tpu.pipeline_mode<synchronous>, transform_indices = @transform_4, window_bounds = array<i64: 1, 16>}, {pipeline_mode = #tpu.pipeline_mode<synchronous>, transform_indices = @transform_5, window_bounds = array<i64: 1, 16>}, {pipeline_mode = #tpu.pipeline_mode<synchronous>, transform_indices = @transform_6, window_bounds = array<i64: 1, 1>}, {transform_indices = @transform_7, window_bounds = array<i64: 1, 1, 8>}]} {
    %c0 = arith.constant 0 : index
    %c0_0 = arith.constant 0 : index
    %0 = vector.load %arg1[%c0, %c0_0] : memref<8x768xf32, #tpu.memory_space<vmem>>, vector<8x768xf32>
    %1 = arith.truncf %0 : vector<8x768xf32> to vector<8x768xbf16>
    %c0_1 = arith.constant 0 : index
    %c0_2 = arith.constant 0 : index
    %2 = vector.load %arg2[%c0_1, %c0_2] : memref<768x256xbf16, #tpu.memory_space<vmem>>, vector<768x256xbf16>
    %cst = arith.constant dense<0.000000e+00> : vector<8x256xf32>
    %3 = tpu.matmul %1, %2, %cst {dimension_numbers = #tpu.dot_dimension_numbers<[1], [0], [0], [1], [0, 0, 1, 1], [], []>} : vector<8x768xbf16>, vector<768x256xbf16>, vector<8x256xf32> -> vector<8x256xf32>
    %c0_3 = arith.constant 0 : index
    %c0_4 = arith.constant 0 : index
    %4 = vector.load %arg3[%c0_3, %c0_4] : memref<1x256xf32, #tpu.memory_space<vmem>>, vector<1x256xf32>
    %5 = vector.broadcast %4 : vector<1x256xf32> to vector<8x256xf32>
    %6 = arith.addf %3, %5 : vector<8x256xf32>
    %cst_5 = arith.constant 0.000000e+00 : f32
    %7 = vector.broadcast %cst_5 : f32 to vector<8x256xf32>
    %8 = arith.cmpf ogt, %6, %7 : vector<8x256xf32>
    %cst_6 = arith.constant 0.00999999977 : f32
    %9 = vector.broadcast %cst_6 : f32 to vector<8x256xf32>
    %10 = arith.mulf %9, %6 : vector<8x256xf32>
    %11 = arith.select %8, %6, %10 : vector<8x256xi1>, vector<8x256xf32>
    %12 = arith.truncf %11 : vector<8x256xf32> to vector<8x256xbf16>
    %c0_7 = arith.constant 0 : index
    %c0_8 = arith.constant 0 : index
    %13 = vector.load %arg4[%c0_7, %c0_8] : memref<256x16xbf16, #tpu.memory_space<vmem>>, vector<256x16xbf16>
    %cst_9 = arith.constant dense<0.000000e+00> : vector<8x16xf32>
    %14 = tpu.matmul %12, %13, %cst_9 {dimension_numbers = #tpu.dot_dimension_numbers<[1], [0], [0], [1], [0, 0, 1, 1], [], []>} : vector<8x256xbf16>, vector<256x16xbf16>, vector<8x16xf32> -> vector<8x16xf32>
    %c0_10 = arith.constant 0 : index
    %c0_11 = arith.constant 0 : index
    %15 = vector.load %arg5[%c0_10, %c0_11] : memref<1x16xf32, #tpu.memory_space<vmem>>, vector<1x16xf32>
    %16 = vector.broadcast %15 : vector<1x16xf32> to vector<8x16xf32>
    %17 = arith.addf %14, %16 : vector<8x16xf32>
    %cst_12 = arith.constant 0.000000e+00 : f32
    %18 = vector.broadcast %cst_12 : f32 to vector<8x16xf32>
    %19 = arith.cmpf ogt, %17, %18 : vector<8x16xf32>
    %cst_13 = arith.constant 0.00999999977 : f32
    %20 = vector.broadcast %cst_13 : f32 to vector<8x16xf32>
    %21 = arith.mulf %20, %17 : vector<8x16xf32>
    %22 = arith.select %19, %17, %21 : vector<8x16xi1>, vector<8x16xf32>
    %c0_14 = arith.constant 0 : index
    %c0_15 = arith.constant 0 : index
    %23 = vector.load %arg6[%c0_14, %c0_15] : memref<1x16xf32, #tpu.memory_space<vmem>>, vector<1x16xf32>
    %cst_16 = arith.constant dense<0.000000e+00> : vector<1x8xf32>
    %24 = tpu.matmul %23, %22, %cst_16 {dimension_numbers = #tpu.dot_dimension_numbers<[1], [1], [0], [0], [0, 0, 1, 0], [], []>} : vector<1x16xf32>, vector<8x16xf32>, vector<1x8xf32> -> vector<1x8xf32>
    %c0_17 = arith.constant 0 : index
    %c0_18 = arith.constant 0 : index
    %25 = vector.load %arg7[%c0_17, %c0_18] : memref<1x1xf32, #tpu.memory_space<vmem>>, vector<1x1xf32>
    %26 = vector.broadcast %25 : vector<1x1xf32> to vector<1x8xf32>
    %27 = arith.addf %24, %26 : vector<1x8xf32>
    %28 = math.tanh %27 : vector<1x8xf32>
    %c0_19 = arith.constant 0 : index
    %c0_20 = arith.constant 0 : index
    %c0_21 = arith.constant 0 : index
    %29 = vector.load %arg8[%c0_19, %c0_20, %c0_21] : memref<1x1x8xf32, #tpu.memory_space<vmem>>, vector<1x1x8xf32>
    %30 = vector.shape_cast %29 : vector<1x1x8xf32> to vector<1x8xf32>
    %31 = vector.shape_cast %28 : vector<1x8xf32> to vector<1x1x8xf32>
    tpu.vector_store %arg8[%c0_19, %c0_20, %c0_21], %31 {strides = array<i32>} : memref<1x1x8xf32, #tpu.memory_space<vmem>>, vector<1x1x8xf32>,
    return
  }
  func.func @transform_0(%arg0: i32) -> (i32, i32) {
    %c0_i32 = arith.constant 0 : i32
    %c0_i32_0 = arith.constant 0 : i32
    return %arg0, %c0_i32 : i32, i32
  }
  func.func @transform_1(%arg0: i32) -> (i32, i32) {
    %c0_i32 = arith.constant 0 : i32
    %c0_i32_0 = arith.constant 0 : i32
    %c0_i32_1 = arith.constant 0 : i32
    return %c0_i32, %c0_i32_0 : i32, i32
  }
  func.func @transform_2(%arg0: i32) -> (i32, i32) {
    %c0_i32 = arith.constant 0 : i32
    %c0_i32_0 = arith.constant 0 : i32
    %c0_i32_1 = arith.constant 0 : i32
    return %c0_i32, %c0_i32_0 : i32, i32
  }
  func.func @transform_3(%arg0: i32) -> (i32, i32) {
    %c0_i32 = arith.constant 0 : i32
    %c0_i32_0 = arith.constant 0 : i32
    %c0_i32_1 = arith.constant 0 : i32
    return %c0_i32, %c0_i32_0 : i32, i32
  }
  func.func @transform_4(%arg0: i32) -> (i32, i32) {
    %c0_i32 = arith.constant 0 : i32
    %c0_i32_0 = arith.constant 0 : i32
    %c0_i32_1 = arith.constant 0 : i32
    return %c0_i32, %c0_i32_0 : i32, i32
  }
  func.func @transform_5(%arg0: i32) -> (i32, i32) {
    %c0_i32 = arith.constant 0 : i32
    %c0_i32_0 = arith.constant 0 : i32
    %c0_i32_1 = arith.constant 0 : i32
    return %c0_i32, %c0_i32_0 : i32, i32
  }
  func.func @transform_6(%arg0: i32) -> (i32, i32) {
    %c0_i32 = arith.constant 0 : i32
    %c0_i32_0 = arith.constant 0 : i32
    %c0_i32_1 = arith.constant 0 : i32
    return %c0_i32, %c0_i32_0 : i32, i32
  }
  func.func @transform_7(%arg0: i32) -> (i32, i32, i32) {
    %c0_i32 = arith.constant 0 : i32
    %c0_i32_0 = arith.constant 0 : i32
    %c0_i32_1 = arith.constant 0 : i32
    return %arg0, %c0_i32, %c0_i32_0 : i32, i32, i32
  }
}

</mosaic_0001>

<bundles_post_ra>
// kernel: tpu_custom_call.1
= control target key start
LH: loop header
LB: loop body
LE: loop exit
PB: predicated region body
PF: predicated region fallthrough
CT: control target
= control target key end

     0   :  { %s1795_s0 = inlined_call_operand.vmem [shape: f32[8,768], index: 0, kind: input, shape index: {}]   ;;  %s1796_s1 = inlined_call_operand.hbm [shape: bf16[768,256], index: 1, kind: input, shape index: {}]   ;;  %s1797_s2 = inlined_call_operand.vmem [shape: f32[1,256], index: 2, kind: input, shape index: {}]   ;;  %s1798_s3 = inlined_call_operand.vmem [shape: bf16[256,16], index: 3, kind: input, shape index: {}]   ;;  %s1799_s4 = inlined_call_operand.vmem [shape: f32[1,16], index: 4, kind: input, shape index: {}]   ;;  %s1800_s5 = inlined_call_operand.vmem [shape: f32[1,16], index: 5, kind: input, shape index: {}]   ;;  %s1801_s6 = inlined_call_operand.<no memory space> [shape: f32[1,1], index: 6, kind: input, shape index: {}]   ;;  %s1802_s7 = inlined_call_operand.hbm [shape: f32[1,1,8], index: 7, kind: output, shape index: {}]  }
   0x1   :  { %v12_v0 = vstv %s1801_s6 }
   0x2   :  { %13 = vst [vmem:[#allocation2] sm:$0x1] %v12_v0 }
   0x3   :  { %14 = vsyncpa [#allocation4], 0 }
   0x4   :  { %15 = vsyncpa [#allocation5], 0  ;;  %s22_s28 = sshll.u32 %s1796_s1, 4  ;;  %s1642_s29 = smov [#allocation3]   ;;  %s23_s28 = int_to_ptr.hbm [resolvable:$true] %s22_s28 }
   0x5   :  { %s24_s30 = sshll.u32 %s1642_s29, 4  ;;  %s1643_s8 = smov 128   ;;  %s25_s30 = int_to_ptr.vmem [resolvable:$true] %s24_s30 }
   0x6   :  { %s1644_s9 = smov 8  }
   0x7   :  { %30 = dma.hbm_to_vmem [thread:$0]  %s23_s28, 12288, %s25_s30, [#allocation4], %s1643_s8, %s1643_s8, %s1644_s9  }
   0x8   :  { %1638 = dma.done.wait [#allocation4], 12288  }
   0x9   :  { %1639 = vsyncadd [#allocation4], 4294955008  ;;  %v1077_v1 = vld [vmem:[#allocation3 + $0x70] sm:$0xf]  ;;  %v1484_v2 = vld [vmem:[#allocation3 + $0x74] sm:$0xf0] }
   0xa   :  { %v1141_v3 = vld [vmem:[#allocation3 + $0xf0] sm:$0xf]  ;;  %v1078_v4 = vor.u32 %v1484_v2, %v1077_v1  ;;  %v1500_v5 = vld [vmem:[#allocation3 + $0xf4] sm:$0xf0]  ;;  %v1069_v12 = vld [vmem:[#allocation3 + $0x60] sm:$0xf] }
   0xb   :  { %v1205_v6 = vld [vmem:[#allocation3 + $0x170] sm:$0xf]  ;;  %v1516_v7 = vld [vmem:[#allocation3 + $0x174] sm:$0xf0]  ;;  %v1142_v8 = vor.u32 %v1500_v5, %v1141_v3  ;;  %v1482_v14 = vld [vmem:[#allocation3 + $0x64] sm:$0xf0] }
   0xc   :  { %v1206_v9 = vor.u32 %v1516_v7, %v1205_v6  ;;  %v1269_v10 = vld [vmem:[#allocation3 + $0x1f0] sm:$0xf]  ;;  %v1532_v11 = vld [vmem:[#allocation3 + $0x1f4] sm:$0xf0]  ;;  %639 = vmatpush.bf16.msra.mxu0 %v1078_v4  ;;  %v1133_v15 = vld [vmem:[#allocation3 + $0xe0] sm:$0xf]  ;;  %v1070_v17 = vor.u32 %v1482_v14, %v1069_v12 }
   0xd   :  { %v1270_v13 = vor.u32 %v1532_v11, %v1269_v10  ;;  %v1498_v16 = vld [vmem:[#allocation3 + $0xe4] sm:$0xf0]  ;;  %652 = vmatpush.bf16.msra.mxu1 %v1142_v8  ;;  %v1197_v19 = vld [vmem:[#allocation3 + $0x160] sm:$0xf]  ;;  %v1061_v24 = vld [vmem:[#allocation3 + $0x50] sm:$0xf] }
   0xe   :  { %665 = vmatpush.bf16.msra.mxu2 %v1206_v9  ;;  %v1134_v18 = vor.u32 %v1498_v16, %v1133_v15  ;;  %v1514_v20 = vld [vmem:[#allocation3 + $0x164] sm:$0xf0]  ;;  %v1261_v21 = vld [vmem:[#allocation3 + $0x1e0] sm:$0xf]  ;;  %v1480_v25 = vld [vmem:[#allocation3 + $0x54] sm:$0xf0] }
   0xf   :  { %678 = vmatpush.bf16.msra.mxu3 %v1270_v13  ;;  %v1198_v22 = vor.u32 %v1514_v20, %v1197_v19  ;;  %v1530_v23 = vld [vmem:[#allocation3 + $0x1e4] sm:$0xf0]  ;;  %v1125_v27 = vld [vmem:[#allocation3 + $0xd0] sm:$0xf]  ;;  %v1496_v28 = vld [vmem:[#allocation3 + $0xd4] sm:$0xf0]  ;;  %v1062_v30 = vor.u32 %v1480_v25, %v1061_v24 }
  0x10   :  { %v1262_v26 = vor.u32 %v1530_v23, %v1261_v21  ;;  %v1189_v29 = vld [vmem:[#allocation3 + $0x150] sm:$0xf]  ;;  %640 = vmatpush.bf16.msra.mxu0 %v1070_v17  ;;  %v1512_v31 = vld [vmem:[#allocation3 + $0x154] sm:$0xf0]  ;;  %v1126_v34 = vor.u32 %v1496_v28, %v1125_v27  ;;  %v1053_v36 = vld [vmem:[#allocation3 + $0x40] sm:$0xf] }
  0x11   :  { %v1253_v32 = vld [vmem:[#allocation3 + $0x1d0] sm:$0xf]  ;;  %v1528_v33 = vld [vmem:[#allocation3 + $0x1d4] sm:$0xf0]  ;;  %653 = vmatpush.bf16.msra.mxu1 %v1134_v18  ;;  %v1190_v35 = vor.u32 %v1512_v31, %v1189_v29  ;;  %v1478_v37 = vld [vmem:[#allocation3 + $0x44] sm:$0xf0] }
  0x12   :  { %666 = vmatpush.bf16.msra.mxu2 %v1198_v22  ;;  %v1117_v38 = vld [vmem:[#allocation3 + $0xc0] sm:$0xf]  ;;  %v1254_v39 = vor.u32 %v1528_v33, %v1253_v32  ;;  %v1494_v40 = vld [vmem:[#allocation3 + $0xc4] sm:$0xf0]  ;;  %v1054_v45 = vor.u32 %v1478_v37, %v1053_v36  ;;  %v1045_v48 = vld [vmem:[#allocation3 + $0x30] sm:$0xf] }
  0x13   :  { %679 = vmatpush.bf16.msra.mxu3 %v1262_v26  ;;  %v1181_v41 = vld [vmem:[#allocation3 + $0x140] sm:$0xf]  ;;  %v1510_v42 = vld [vmem:[#allocation3 + $0x144] sm:$0xf0]  ;;  %v1118_v46 = vor.u32 %v1494_v40, %v1117_v38  ;;  %v1476_v49 = vld [vmem:[#allocation3 + $0x34] sm:$0xf0] }
  0x14   :  { %v1245_v43 = vld [vmem:[#allocation3 + $0x1c0] sm:$0xf]  ;;  %v1526_v44 = vld [vmem:[#allocation3 + $0x1c4] sm:$0xf0]  ;;  %641 = vmatpush.bf16.msra.mxu0 %v1062_v30  ;;  %v1182_v47 = vor.u32 %v1510_v42, %v1181_v41  ;;  %v1109_v50 = vld [vmem:[#allocation3 + $0xb0] sm:$0xf]  ;;  %v1046_v57 = vor.u32 %v1476_v49, %v1045_v48 }
  0x15   :  { %654 = vmatpush.bf16.msra.mxu1 %v1126_v34  ;;  %v1246_v51 = vor.u32 %v1526_v44, %v1245_v43  ;;  %v1492_v52 = vld [vmem:[#allocation3 + $0xb4] sm:$0xf0]  ;;  %v1173_v53 = vld [vmem:[#allocation3 + $0x130] sm:$0xf]  ;;  %v1037_v60 = vld [vmem:[#allocation3 + $0x20] sm:$0xf] }
  0x16   :  { %667 = vmatpush.bf16.msra.mxu2 %v1190_v35  ;;  %v1508_v54 = vld [vmem:[#allocation3 + $0x134] sm:$0xf0]  ;;  %v1237_v55 = vld [vmem:[#allocation3 + $0x1b0] sm:$0xf]  ;;  %v1110_v58 = vor.u32 %v1492_v52, %v1109_v50  ;;  %v1474_v61 = vld [vmem:[#allocation3 + $0x24] sm:$0xf0] }
  0x17   :  { %680 = vmatpush.bf16.msra.mxu3 %v1254_v39  ;;  %v1524_v56 = vld [vmem:[#allocation3 + $0x1b4] sm:$0xf0]  ;;  %v1174_v59 = vor.u32 %v1508_v54, %v1173_v53  ;;  %v1101_v62 = vld [vmem:[#allocation3 + $0xa0] sm:$0xf]  ;;  %v1490_v0 = vld [vmem:[#allocation3 + $0xa4] sm:$0xf0]  ;;  %v1038_v5 = vor.u32 %v1474_v61, %v1037_v60 }
  0x18   :  { %642 = vmatpush.bf16.msra.mxu0 %v1054_v45  ;;  %v1238_v63 = vor.u32 %v1524_v56, %v1237_v55  ;;  %v1165_v1 = vld [vmem:[#allocation3 + $0x120] sm:$0xf]  ;;  %v1506_v2 = vld [vmem:[#allocation3 + $0x124] sm:$0xf0]  ;;  %v1102_v6 = vor.u32 %v1490_v0, %v1101_v62  ;;  %v1029_v8 = vld [vmem:[#allocation3 + $0x10] sm:$0xf] }
  0x19   :  { %655 = vmatpush.bf16.msra.mxu1 %v1118_v46  ;;  %v1229_v3 = vld [vmem:[#allocation3 + $0x1a0] sm:$0xf]  ;;  %v1522_v4 = vld [vmem:[#allocation3 + $0x1a4] sm:$0xf0]  ;;  %v1166_v7 = vor.u32 %v1506_v2, %v1165_v1  ;;  %v1472_v9 = vld [vmem:[#allocation3 + $0x14] sm:$0xf0] }
  0x1a   :  { %668 = vmatpush.bf16.msra.mxu2 %v1182_v47  ;;  %v1093_v10 = vld [vmem:[#allocation3 + $0x90] sm:$0xf]  ;;  %v1230_v11 = vor.u32 %v1522_v4, %v1229_v3  ;;  %v1488_v12 = vld [vmem:[#allocation3 + $0x94] sm:$0xf0]  ;;  %v1030_v17 = vor.u32 %v1472_v9, %v1029_v8  ;;  %v1021_v18 = vld [vmem:[#allocation3] sm:$0xf] }
  0x1b   :  { %681 = vmatpush.bf16.msra.mxu3 %v1246_v51  ;;  %v1157_v13 = vld [vmem:[#allocation3 + $0x110] sm:$0xf]  ;;  %v1504_v14 = vld [vmem:[#allocation3 + $0x114] sm:$0xf0]  ;;  %v1470_v19 = vld [vmem:[#allocation3 + $0x4] sm:$0xf0]  ;;  %v1094_v20 = vor.u32 %v1488_v12, %v1093_v10 }
  0x1c   :  { %643 = vmatpush.bf16.msra.mxu0 %v1046_v57  ;;  %v1221_v15 = vld [vmem:[#allocation3 + $0x190] sm:$0xf]  ;;  %v1520_v16 = vld [vmem:[#allocation3 + $0x194] sm:$0xf0]  ;;  %v1158_v21 = vor.u32 %v1504_v14, %v1157_v13  ;;  %v1085_v22 = vld [vmem:[#allocation3 + $0x80] sm:$0xf]  ;;  %v1022_v32 = vor.u32 %v1470_v19, %v1021_v18 }
  0x1d   :  { %656 = vmatpush.bf16.msra.mxu1 %v1110_v58  ;;  %v1486_v23 = vld [vmem:[#allocation3 + $0x84] sm:$0xf0]  ;;  %v1149_v24 = vld [vmem:[#allocation3 + $0x100] sm:$0xf]  ;;  %v1222_v25 = vor.u32 %v1520_v16, %v1221_v15  ;;  %v1333_v29 = vld [vmem:[#allocation3 + $0x270] sm:$0xf] }
  0x1e   :  { %669 = vmatpush.bf16.msra.mxu2 %v1174_v59  ;;  %v1502_v26 = vld [vmem:[#allocation3 + $0x104] sm:$0xf0]  ;;  %v1213_v27 = vld [vmem:[#allocation3 + $0x180] sm:$0xf]  ;;  %v1548_v30 = vld [vmem:[#allocation3 + $0x274] sm:$0xf0]  ;;  %v1086_v36 = vor.u32 %v1486_v23, %v1085_v22 }
  0x1f   :  { %682 = vmatpush.bf16.msra.mxu3 %v1238_v63  ;;  %v1518_v28 = vld [vmem:[#allocation3 + $0x184] sm:$0xf0]  ;;  %v1397_v31 = vld [vmem:[#allocation3 + $0x2f0] sm:$0xf]  ;;  %v1564_v33 = vld [vmem:[#allocation3 + $0x2f4] sm:$0xf0]  ;;  %v1150_v37 = vor.u32 %v1502_v26, %v1149_v24  ;;  %v1334_v41 = vor.u32 %v1548_v30, %v1333_v29 }
  0x20   :  { %644 = vmatpush.bf16.msra.mxu0 %v1038_v5  ;;  %v1483_v34 = vld [vmem:[#allocation3 + $0x74] sm:$0xf]  ;;  %v1079_v35 = vld [vmem:[#allocation3 + $0x78] sm:$0xf0]  ;;  %v1214_v40 = vor.u32 %v1518_v28, %v1213_v27  ;;  %v1398_v42 = vor.u32 %v1564_v33, %v1397_v31  ;;  %v1325_v44 = vld [vmem:[#allocation3 + $0x260] sm:$0xf] }
  0x21   :  { %657 = vmatpush.bf16.msra.mxu1 %v1102_v6  ;;  %v1499_v38 = vld [vmem:[#allocation3 + $0xf4] sm:$0xf]  ;;  %v1143_v39 = vld [vmem:[#allocation3 + $0xf8] sm:$0xf0]  ;;  %v1082_v43 = vor.u32 %v1483_v34, %v1079_v35  ;;  %v1546_v45 = vld [vmem:[#allocation3 + $0x264] sm:$0xf0] }
  0x22   :  { %670 = vmatpush.bf16.msra.mxu2 %v1166_v7  ;;  %v1389_v46 = vld [vmem:[#allocation3 + $0x2e0] sm:$0xf]  ;;  %v1146_v47 = vor.u32 %v1499_v38, %v1143_v39  ;;  %v1562_v48 = vld [vmem:[#allocation3 + $0x2e4] sm:$0xf0]  ;;  %v1481_v49 = vld [vmem:[#allocation3 + $0x64] sm:$0xf]  ;;  %v1326_v54 = vor.u32 %v1546_v45, %v1325_v44 }
  0x23   :  { %683 = vmatpush.bf16.msra.mxu3 %v1230_v11  ;;  %v1071_v50 = vld [vmem:[#allocation3 + $0x68] sm:$0xf0]  ;;  %v1497_v51 = vld [vmem:[#allocation3 + $0xe4] sm:$0xf]  ;;  %v1317_v55 = vld [vmem:[#allocation3 + $0x250] sm:$0xf]  ;;  %v1390_v58 = vor.u32 %v1562_v48, %v1389_v46 }
  0x24   :  { %645 = vmatpush.bf16.msra.mxu0 %v1030_v17  ;;  %v1135_v52 = vld [vmem:[#allocation3 + $0xe8] sm:$0xf0]  ;;  %v45_v53 = vld [vmem:[%s1795_s0] sm:$0xff]  ;;  %v1544_v56 = vld [vmem:[#allocation3 + $0x254] sm:$0xf0]  ;;  %v1074_v59 = vor.u32 %v1481_v49, %v1071_v50  ;;  %vm972_vm3 = vcmask 130048  }
  0x25   :  { %658 = vmatpush.bf16.msra.mxu1 %v1094_v20  ;;  %v1696_v57 = vpack.c.bf16 %v45_v53, %v45_v53  ;;  %v1381_v60 = vld [vmem:[#allocation3 + $0x2d0] sm:$0xf]  ;;  %v1560_v61 = vld [vmem:[#allocation3 + $0x2d4] sm:$0xf0]  ;;  %v1479_v62 = vld [vmem:[#allocation3 + $0x54] sm:$0xf]  ;;  %v1138_v63 = vor.u32 %v1497_v51, %v1135_v52  ;;  %v1318_v7 = vor.u32 %v1544_v56, %v1317_v55 }
  0x26   :  { %671 = vmatpush.bf16.msra.mxu2 %v1158_v21  ;;  %v1063_v0 = vld [vmem:[#allocation3 + $0x58] sm:$0xf0]  ;;  %v46_v1 = vld [vmem:[%s1795_s0 + $0x8] sm:$0xff]  ;;  %v47_v2 = vld [vmem:[%s1795_s0 + $0x10] sm:$0xff]  ;;  %v1382_v9 = vor.u32 %v1560_v61, %v1381_v60  ;;  %s1009_s9 = sshll.u32 %s1802_s7, 4  ;;  %vm1000_vm4 = vcmask 57344   ;;  %s1010_s9 = int_to_ptr.hbm [resolvable:$true] %s1009_s9 }
  0x27   :  { %684 = vmatpush.bf16.msra.mxu3 %v1222_v25  ;;  %v1495_v3 = vld [vmem:[#allocation3 + $0xd4] sm:$0xf]  ;;  %v1127_v4 = vld [vmem:[#allocation3 + $0xd8] sm:$0xf0]  ;;  %v1705_v5 = vpack.c.bf16 %v46_v1, %v46_v1  ;;  %v1707_v6 = vpack.c.bf16 %v47_v2, %v47_v2  ;;  %v1309_v8 = vld [vmem:[#allocation3 + $0x240] sm:$0xf]  ;;  %v1066_v10 = vor.u32 %v1479_v62, %v1063_v0 }
  0x28   :  { %646 = vmatpush.bf16.msra.mxu0 %v1022_v32  ;;  %v1542_v11 = vld [vmem:[#allocation3 + $0x244] sm:$0xf0]  ;;  %v1373_v12 = vld [vmem:[#allocation3 + $0x2c0] sm:$0xf]  ;;  %v48_v13 = vld [vmem:[%s1795_s0 + $0x18] sm:$0xff]  ;;  %v1130_v14 = vor.u32 %v1495_v3, %v1127_v4 }
  0x29   :  { %659 = vmatpush.bf16.msra.mxu1 %v1086_v36  ;;  %v1558_v15 = vld [vmem:[#allocation3 + $0x2c4] sm:$0xf0]  ;;  %v1477_v16 = vld [vmem:[#allocation3 + $0x44] sm:$0xf]  ;;  %v1055_v17 = vld [vmem:[#allocation3 + $0x48] sm:$0xf0]  ;;  %v1713_v18 = vpack.c.bf16 %v48_v13, %v48_v13  ;;  %v1310_v21 = vor.u32 %v1542_v11, %v1309_v8 }
  0x2a   :  { %672 = vmatpush.bf16.msra.mxu2 %v1150_v37  ;;  %v1493_v19 = vld [vmem:[#allocation3 + $0xc4] sm:$0xf]  ;;  %v1119_v20 = vld [vmem:[#allocation3 + $0xc8] sm:$0xf0]  ;;  %v1374_v22 = vor.u32 %v1558_v15, %v1373_v12  ;;  %v1058_v23 = vor.u32 %v1477_v16, %v1055_v17  ;;  %v1301_v24 = vld [vmem:[#allocation3 + $0x230] sm:$0xf] }
  0x2b   :  { %685 = vmatpush.bf16.msra.mxu3 %v1214_v40  ;;  %647 = vmatmul.bf16.vlgmr.msra.gmra.mxu0 %v1696_v57  ;;  %v1540_v25 = vld [vmem:[#allocation3 + $0x234] sm:$0xf0]  ;;  %v1365_v26 = vld [vmem:[#allocation3 + $0x2b0] sm:$0xf]  ;;  %v1122_v27 = vor.u32 %v1493_v19, %v1119_v20  ;;  %v1475_v29 = vld [vmem:[#allocation3 + $0x34] sm:$0xf] }
  0x2c   :  { %691 = vmatpush.bf16.msrb.mxu0 %v1334_v41  ;;  %660 = vmatmul.bf16.vlgmr.msra.gmra.mxu1 %v1705_v5  ;;  %v1556_v28 = vld [vmem:[#allocation3 + $0x2b4] sm:$0xf0]  ;;  %v1047_v30 = vld [vmem:[#allocation3 + $0x38] sm:$0xf0]  ;;  %v1491_v31 = vld [vmem:[#allocation3 + $0xb4] sm:$0xf]  ;;  %v1302_v33 = vor.u32 %v1540_v25, %v1301_v24 }
  0x2d   :  { %704 = vmatpush.bf16.msrb.mxu1 %v1398_v42  ;;  %673 = vmatmul.bf16.vlgmr.msra.gmra.mxu2 %v1707_v6  ;;  %v1111_v32 = vld [vmem:[#allocation3 + $0xb8] sm:$0xf0]  ;;  %v1366_v34 = vor.u32 %v1556_v28, %v1365_v26  ;;  %v1050_v35 = vor.u32 %v1475_v29, %v1047_v30  ;;  %v1293_v36 = vld [vmem:[#allocation3 + $0x220] sm:$0xf]  ;;  %v1538_v37 = vld [vmem:[#allocation3 + $0x224] sm:$0xf0] }
  0x2e   :  { %717 = vmatpush.bf16.msrb.mxu2 %v1082_v43  ;;  %686 = vmatmul.bf16.vlgmr.msra.gmra.mxu3 %v1713_v18  ;;  %v1357_v38 = vld [vmem:[#allocation3 + $0x2a0] sm:$0xf]  ;;  %v1114_v39 = vor.u32 %v1491_v31, %v1111_v32  ;;  %v1554_v40 = vld [vmem:[#allocation3 + $0x2a4] sm:$0xf0]  ;;  %v1473_v41 = vld [vmem:[#allocation3 + $0x24] sm:$0xf]  ;;  %v1294_v45 = vor.u32 %v1538_v37, %v1293_v36 }
  0x2f   :  { %730 = vmatpush.bf16.msrb.mxu3 %v1146_v47  ;;  %v1039_v42 = vld [vmem:[#allocation3 + $0x28] sm:$0xf0]  ;;  %v1489_v43 = vld [vmem:[#allocation3 + $0xa4] sm:$0xf]  ;;  %v1358_v46 = vor.u32 %v1554_v40, %v1357_v38  ;;  %v1285_v48 = vld [vmem:[#allocation3 + $0x210] sm:$0xf] }
  0x30   :  { %692 = vmatpush.bf16.msrb.mxu0 %v1326_v54  ;;  %v1103_v44 = vld [vmem:[#allocation3 + $0xa8] sm:$0xf0]  ;;  %v1042_v47 = vor.u32 %v1473_v41, %v1039_v42  ;;  %v1536_v49 = vld [vmem:[#allocation3 + $0x214] sm:$0xf0]  ;;  %v1349_v50 = vld [vmem:[#allocation3 + $0x290] sm:$0xf] }
  0x31   :  { %705 = vmatpush.bf16.msrb.mxu1 %v1390_v58  ;;  %v1106_v51 = vor.u32 %v1489_v43, %v1103_v44  ;;  %v1552_v52 = vld [vmem:[#allocation3 + $0x294] sm:$0xf0]  ;;  %v1471_v53 = vld [vmem:[#allocation3 + $0x14] sm:$0xf]  ;;  %v1031_v54 = vld [vmem:[#allocation3 + $0x18] sm:$0xf0]  ;;  %v1286_v58 = vor.u32 %v1536_v49, %v1285_v48 }
  0x32   :  { %718 = vmatpush.bf16.msrb.mxu2 %v1074_v59  ;;  %v1487_v55 = vld [vmem:[#allocation3 + $0x94] sm:$0xf]  ;;  %v1095_v56 = vld [vmem:[#allocation3 + $0x98] sm:$0xf0]  ;;  %v1277_v59 = vld [vmem:[#allocation3 + $0x200] sm:$0xf]  ;;  %v1350_v61 = vor.u32 %v1552_v52, %v1349_v50  ;;  %v1034_v62 = vor.u32 %v1471_v53, %v1031_v54 }
  0x33   :  { %731 = vmatpush.bf16.msrb.mxu3 %v1138_v63  ;;  %v1534_v60 = vld [vmem:[#allocation3 + $0x204] sm:$0xf0]  ;;  %v1341_v63 = vld [vmem:[#allocation3 + $0x280] sm:$0xf]  ;;  %v1469_v1 = vld [vmem:[#allocation3 + $0x4] sm:$0xf]  ;;  %v1098_v2 = vor.u32 %v1487_v55, %v1095_v56 }
  0x34   :  { %693 = vmatpush.bf16.msrb.mxu0 %v1318_v7  ;;  %v1550_v0 = vld [vmem:[#allocation3 + $0x284] sm:$0xf0]  ;;  %v1023_v3 = vld [vmem:[#allocation3 + $0x8] sm:$0xf0]  ;;  %v1485_v4 = vld [vmem:[#allocation3 + $0x84] sm:$0xf]  ;;  %v1278_v11 = vor.u32 %v1534_v60, %v1277_v59 }
  0x35   :  { %706 = vmatpush.bf16.msrb.mxu1 %v1382_v9  ;;  %v1087_v7 = vld [vmem:[#allocation3 + $0x88] sm:$0xf0]  ;;  %v1515_v8 = vld [vmem:[#allocation3 + $0x174] sm:$0xf]  ;;  %v1207_v9 = vld [vmem:[#allocation3 + $0x178] sm:$0xf0]  ;;  %v1342_v15 = vor.u32 %v1550_v0, %v1341_v63  ;;  %v1026_v16 = vor.u32 %v1469_v1, %v1023_v3 }
  0x36   :  { %719 = vmatpush.bf16.msrb.mxu2 %v1066_v10  ;;  %v1531_v10 = vld [vmem:[#allocation3 + $0x1f4] sm:$0xf]  ;;  %v1271_v12 = vld [vmem:[#allocation3 + $0x1f8] sm:$0xf0]  ;;  %v1513_v26 = vld [vmem:[#allocation3 + $0x164] sm:$0xf] }
  0x37   :  { %732 = vmatpush.bf16.msrb.mxu3 %v1130_v14  ;;  %v1547_v13 = vld [vmem:[#allocation3 + $0x274] sm:$0xf]  ;;  %v1335_v14 = vld [vmem:[#allocation3 + $0x278] sm:$0xf0]  ;;  %v1274_v24 = vor.u32 %v1531_v10, %v1271_v12  ;;  %v1529_v28 = vld [vmem:[#allocation3 + $0x1e4] sm:$0xf] }
  0x38   :  { %694 = vmatpush.bf16.msrb.mxu0 %v1310_v21  ;;  %v1563_v17 = vld [vmem:[#allocation3 + $0x2f4] sm:$0xf]  ;;  %v1399_v19 = vld [vmem:[#allocation3 + $0x2f8] sm:$0xf0]  ;;  %v1090_v21 = vor.u32 %v1485_v4, %v1087_v7  ;;  %v1338_v25 = vor.u32 %v1547_v13, %v1335_v14  ;;  %v1263_v31 = vld [vmem:[#allocation3 + $0x1e8] sm:$0xf0] }
  0x39   :  { %707 = vmatpush.bf16.msrb.mxu1 %v1374_v22  ;;  %v49_v20 = vld [vmem:[%s1795_s0 + $0x20] sm:$0xff]  ;;  %v1210_v22 = vor.u32 %v1515_v8, %v1207_v9  ;;  %v1402_v29 = vor.u32 %v1563_v17, %v1399_v19  ;;  %v1391_v36 = vld [vmem:[#allocation3 + $0x2e8] sm:$0xf0]  ;;  %v1266_v38 = vor.u32 %v1529_v28, %v1263_v31  ;;  %v1511_v40 = vld [vmem:[#allocation3 + $0x154] sm:$0xf] }
  0x3a   :  { %720 = vmatpush.bf16.msrb.mxu2 %v1058_v23  ;;  %v50_v23 = vld [vmem:[%s1795_s0 + $0x28] sm:$0xff]  ;;  %v1723_v30 = vpack.c.bf16 %v49_v20, %v49_v20  ;;  %v1191_v41 = vld [vmem:[#allocation3 + $0x158] sm:$0xf0]  ;;  %v1527_v42 = vld [vmem:[#allocation3 + $0x1d4] sm:$0xf] }
  0x3b   :  { %733 = vmatpush.bf16.msrb.mxu3 %v1122_v27  ;;  %v1199_v27 = vld [vmem:[#allocation3 + $0x168] sm:$0xf0]  ;;  %v1545_v32 = vld [vmem:[#allocation3 + $0x264] sm:$0xf]  ;;  %v1255_v44 = vld [vmem:[#allocation3 + $0x1d8] sm:$0xf0]  ;;  %v1194_v49 = vor.u32 %v1511_v40, %v1191_v41 }
  0x3c   :  { %695 = vmatpush.bf16.msrb.mxu0 %v1302_v33  ;;  %v1327_v33 = vld [vmem:[#allocation3 + $0x268] sm:$0xf0]  ;;  %v1202_v37 = vor.u32 %v1513_v26, %v1199_v27  ;;  %v1383_v48 = vld [vmem:[#allocation3 + $0x2d8] sm:$0xf0]  ;;  %v1258_v50 = vor.u32 %v1527_v42, %v1255_v44  ;;  %v1509_v52 = vld [vmem:[#allocation3 + $0x144] sm:$0xf] }
  0x3d   :  { %708 = vmatpush.bf16.msrb.mxu1 %v1366_v34  ;;  %v1725_v34 = vpack.c.bf16 %v50_v23, %v50_v23  ;;  %v1183_v53 = vld [vmem:[#allocation3 + $0x148] sm:$0xf0]  ;;  %v1525_v54 = vld [vmem:[#allocation3 + $0x1c4] sm:$0xf]  ;;  %v1507_v63 = vld [vmem:[#allocation3 + $0x134] sm:$0xf] }
  0x3e   :  { %721 = vmatpush.bf16.msrb.mxu2 %v1050_v35  ;;  %v1561_v35 = vld [vmem:[#allocation3 + $0x2e4] sm:$0xf]  ;;  %v1247_v56 = vld [vmem:[#allocation3 + $0x1c8] sm:$0xf0]  ;;  %v1175_v0 = vld [vmem:[#allocation3 + $0x138] sm:$0xf0] }
  0x3f   :  { %734 = vmatpush.bf16.msrb.mxu3 %v1114_v39  ;;  %v1330_v39 = vor.u32 %v1545_v32, %v1327_v33  ;;  %v1394_v43 = vor.u32 %v1561_v35, %v1391_v36  ;;  %v1311_v59 = vld [vmem:[#allocation3 + $0x248] sm:$0xf0]  ;;  %v1557_v60 = vld [vmem:[#allocation3 + $0x2c4] sm:$0xf]  ;;  %v1523_v1 = vld [vmem:[#allocation3 + $0x1b4] sm:$0xf]  ;;  %v1178_v10 = vor.u32 %v1507_v63, %v1175_v0 }
  0x40   :  { %696 = vmatpush.bf16.msrb.mxu0 %v1294_v45  ;;  %v1543_v45 = vld [vmem:[#allocation3 + $0x254] sm:$0xf]  ;;  %v1239_v3 = vld [vmem:[#allocation3 + $0x1b8] sm:$0xf0]  ;;  %v1505_v13 = vld [vmem:[#allocation3 + $0x124] sm:$0xf] }
  0x41   :  { %709 = vmatpush.bf16.msrb.mxu1 %v1358_v46  ;;  %v1319_v46 = vld [vmem:[#allocation3 + $0x258] sm:$0xf0]  ;;  %v1539_v4 = vld [vmem:[#allocation3 + $0x234] sm:$0xf]  ;;  %v1167_v14 = vld [vmem:[#allocation3 + $0x128] sm:$0xf0] }
  0x42   :  { %722 = vmatpush.bf16.msrb.mxu2 %v1042_v47  ;;  %v1559_v47 = vld [vmem:[#allocation3 + $0x2d4] sm:$0xf]  ;;  %v1303_v7 = vld [vmem:[#allocation3 + $0x238] sm:$0xf0]  ;;  %v1231_v17 = vld [vmem:[#allocation3 + $0x1a8] sm:$0xf0]  ;;  %v1170_v23 = vor.u32 %v1505_v13, %v1167_v14 }
  0x43   :  { %735 = vmatpush.bf16.msrb.mxu3 %v1106_v51  ;;  %v1322_v51 = vor.u32 %v1543_v45, %v1319_v46  ;;  %v1386_v55 = vor.u32 %v1559_v47, %v1383_v48  ;;  %v1555_v8 = vld [vmem:[#allocation3 + $0x2b4] sm:$0xf]  ;;  %v1367_v9 = vld [vmem:[#allocation3 + $0x2b8] sm:$0xf0]  ;;  %v1306_v12 = vor.u32 %v1539_v4, %v1303_v7  ;;  %v1537_v19 = vld [vmem:[#allocation3 + $0x224] sm:$0xf] }
  0x44   :  { %697 = vmatpush.bf16.msrb.mxu0 %v1286_v58  ;;  %v1541_v58 = vld [vmem:[#allocation3 + $0x244] sm:$0xf]  ;;  %v1295_v20 = vld [vmem:[#allocation3 + $0x228] sm:$0xf0]  ;;  %v1503_v26 = vld [vmem:[#allocation3 + $0x114] sm:$0xf] }
  0x45   :  { %710 = vmatpush.bf16.msrb.mxu1 %v1350_v61  ;;  %v1186_v61 = vor.u32 %v1509_v52, %v1183_v53  ;;  %v1159_v27 = vld [vmem:[#allocation3 + $0x118] sm:$0xf0]  ;;  %v1519_v28 = vld [vmem:[#allocation3 + $0x194] sm:$0xf]  ;;  %v1501_v40 = vld [vmem:[#allocation3 + $0x104] sm:$0xf] }
  0x46   :  { %723 = vmatpush.bf16.msrb.mxu2 %v1034_v62  ;;  %v1250_v62 = vor.u32 %v1525_v54, %v1247_v56  ;;  %v1223_v31 = vld [vmem:[#allocation3 + $0x198] sm:$0xf0]  ;;  %v1535_v32 = vld [vmem:[#allocation3 + $0x214] sm:$0xf]  ;;  %v1151_v41 = vld [vmem:[#allocation3 + $0x108] sm:$0xf0] }
  0x47   :  { %736 = vmatpush.bf16.msrb.mxu3 %v1098_v2  ;;  %v1287_v33 = vld [vmem:[#allocation3 + $0x218] sm:$0xf0]  ;;  %v1551_v35 = vld [vmem:[#allocation3 + $0x294] sm:$0xf]  ;;  %v1517_v42 = vld [vmem:[#allocation3 + $0x184] sm:$0xf] }
  0x48   :  { %698 = vmatpush.bf16.msrb.mxu0 %v1278_v11  ;;  %v1242_v11 = vor.u32 %v1523_v1, %v1239_v3  ;;  %v1351_v36 = vld [vmem:[#allocation3 + $0x298] sm:$0xf0]  ;;  %v1215_v44 = vld [vmem:[#allocation3 + $0x188] sm:$0xf0]  ;;  %v1533_v45 = vld [vmem:[#allocation3 + $0x204] sm:$0xf] }
  0x49   :  { %711 = vmatpush.bf16.msrb.mxu1 %v1342_v15  ;;  %v1521_v15 = vld [vmem:[#allocation3 + $0x1a4] sm:$0xf]  ;;  %v1279_v46 = vld [vmem:[#allocation3 + $0x208] sm:$0xf0]  ;;  %v1572_v53 = vld [vmem:[%s1798_s3 + $0x38] sm:$0xff] }
  0x4a   :  { %724 = vmatpush.bf16.msrb.mxu2 %v1026_v16  ;;  %v1370_v16 = vor.u32 %v1555_v8, %v1367_v9  ;;  %v1549_v47 = vld [vmem:[#allocation3 + $0x284] sm:$0xf]  ;;  %v1343_v48 = vld [vmem:[#allocation3 + $0x288] sm:$0xf0] }
  0x4b   :  { %737 = vmatpush.bf16.msrb.mxu3 %v1090_v21  ;;  %699 = vmatmul.bf16.vlgmr.msrb.gmra.mxu0 %v1723_v30  ;;  %v1553_v21 = vld [vmem:[#allocation3 + $0x2a4] sm:$0xf]  ;;  %v1346_v52 = vor.u32 %v1549_v47, %v1343_v48  ;;  %v1571_v54 = vld [vmem:[%s1798_s3 + $0x30] sm:$0xff] }
  0x4c   :  { %743 = vmatpush.bf16.msra.mxu0 %v1210_v22  ;;  %712 = vmatmul.bf16.vlgmr.msrb.gmra.mxu1 %v1725_v34  ;;  %v1359_v22 = vld [vmem:[#allocation3 + $0x2a8] sm:$0xf0]  ;;  %v1569_v56 = vld [vmem:[%s1798_s3 + $0x20] sm:$0xff] }
  0x4d   :  { %756 = vmatpush.bf16.msra.mxu1 %v1274_v24  ;;  %725 = vmatmul.bf16.vlgmr.msrb.gmra.mxu2 %v1696_v57  ;;  %v1375_v57 = vld [vmem:[#allocation3 + $0x2c8] sm:$0xf0]  ;;  %v1234_v24 = vor.u32 %v1521_v15, %v1231_v17  ;;  %v1577_v4 = vld [vmem:[%s1798_s3 + $0x60] sm:$0xff] }
  0x4e   :  { %769 = vmatpush.bf16.msra.mxu2 %v1338_v25  ;;  %738 = vmatmul.bf16.vlgmr.msrb.gmra.mxu3 %v1705_v5  ;;  %v1314_v5 = vor.u32 %v1541_v58, %v1311_v59  ;;  %v1378_v2 = vor.u32 %v1557_v60, %v1375_v57  ;;  %v1298_v25 = vor.u32 %v1537_v19, %v1295_v20  ;;  %v1565_v59 = vld [vmem:[%s1798_s3] sm:$0xff]  ;;  %v1575_v14 = vld [vmem:[%s1798_s3 + $0x50] sm:$0xff]  ;;  %v1574_v20 = vld [vmem:[%s1798_s3 + $0x48] sm:$0xff] }
  0x4f   :  { %782 = vmatpush.bf16.msra.mxu3 %v1402_v29  ;;  %v1362_v29 = vor.u32 %v1553_v21, %v1359_v22  ;;  %v153_v60 = vld [vmem:[%s1797_s2] sm:$0x3] }
  0x50   :  { %744 = vmatpush.bf16.msra.mxu0 %v1202_v37  ;;  %v1162_v37 = vor.u32 %v1503_v26, %v1159_v27  ;;  %v1573_v27 = vld [vmem:[%s1798_s3 + $0x40] sm:$0xff] }
  0x51   :  { %757 = vmatpush.bf16.msra.mxu1 %v1266_v38  ;;  %v1226_v38 = vor.u32 %v1519_v28, %v1223_v31  ;;  %v156_v31 = vperm.slane %v153_v60, 1 }
  0x52   :  { %770 = vmatpush.bf16.msra.mxu2 %v1330_v39  ;;  %v1290_v39 = vor.u32 %v1535_v32, %v1287_v33 }
  0x53   :  { %783 = vmatpush.bf16.msra.mxu3 %v1394_v43  ;;  %v1354_v43 = vor.u32 %v1551_v35, %v1351_v36 }
  0x54   :  { %745 = vmatpush.bf16.msra.mxu0 %v1194_v49  ;;  %v1154_v49 = vor.u32 %v1501_v40, %v1151_v41 }
  0x55   :  { %758 = vmatpush.bf16.msra.mxu1 %v1258_v50  ;;  %v1218_v50 = vor.u32 %v1517_v42, %v1215_v44 }
  0x56   :  { %771 = vmatpush.bf16.msra.mxu2 %v1322_v51  ;;  %v1282_v51 = vor.u32 %v1533_v45, %v1279_v46 }
  0x57   :  { %784 = vmatpush.bf16.msra.mxu3 %v1386_v55  ;;  %v1570_v55 = vld [vmem:[%s1798_s3 + $0x28] sm:$0xff] }
  0x58   :  { %746 = vmatpush.bf16.msra.mxu0 %v1186_v61  ;;  %v1580_v61 = vld [vmem:[%s1798_s3 + $0x78] sm:$0xff] }
  0x59   :  { %759 = vmatpush.bf16.msra.mxu1 %v1250_v62  ;;  %v1579_v62 = vld [vmem:[%s1798_s3 + $0x70] sm:$0xff] }
  0x5a   :  { %772 = vmatpush.bf16.msra.mxu2 %v1314_v5  ;;  %v155_v5 = vperm.slane %v153_v60, 0 }
  0x5b   :  { %785 = vmatpush.bf16.msra.mxu3 %v1378_v2  ;;  %v1578_v2 = vld [vmem:[%s1798_s3 + $0x68] sm:$0xff] }
  0x5c   :  { %747 = vmatpush.bf16.msra.mxu0 %v1178_v10 }
  0x5d   :  { %760 = vmatpush.bf16.msra.mxu1 %v1242_v11 }
  0x5e   :  { %773 = vmatpush.bf16.msra.mxu2 %v1306_v12  ;;  %v1576_v12 = vld [vmem:[%s1798_s3 + $0x58] sm:$0xff] }
  0x5f   :  { %786 = vmatpush.bf16.msra.mxu3 %v1370_v16 }
  0x60   :  { %748 = vmatpush.bf16.msra.mxu0 %v1170_v23 }
  0x61   :  { %761 = vmatpush.bf16.msra.mxu1 %v1234_v24 }
  0x62   :  { %774 = vmatpush.bf16.msra.mxu2 %v1298_v25 }
  0x63   :  { %787 = vmatpush.bf16.msra.mxu3 %v1362_v29 }
  0x64   :  { %749 = vmatpush.bf16.msra.mxu0 %v1162_v37 }
  0x65   :  { %762 = vmatpush.bf16.msra.mxu1 %v1226_v38 }
  0x66   :  { %775 = vmatpush.bf16.msra.mxu2 %v1290_v39 }
  0x67   :  { %788 = vmatpush.bf16.msra.mxu3 %v1354_v43 }
  0x68   :  { %750 = vmatpush.bf16.msra.mxu0 %v1154_v49 }
  0x69   :  { %763 = vmatpush.bf16.msra.mxu1 %v1218_v50 }
  0x6a   :  { %776 = vmatpush.bf16.msra.mxu2 %v1282_v51 }
  0x6b   :  { %789 = vmatpush.bf16.msra.mxu3 %v1346_v52  ;;  %751 = vmatmul.bf16.vlgmr.msra.gmra.mxu0 %v1707_v6  ;;  %v1568_v6 = vld [vmem:[%s1798_s3 + $0x18] sm:$0xff]  ;;  %v965_v52 = vld [vmem:[#allocation2] sm:$0x1] }
  0x6c   :  { %935 = vmatpush.bf16.msrb.mxu0 %v1572_v53  ;;  %764 = vmatmul.bf16.vlgmr.msra.gmra.mxu1 %v1713_v18  ;;  %v1567_v18 = vld [vmem:[%s1798_s3 + $0x10] sm:$0xff]  ;;  %v1645_v53 = vmov 0  }
  0x6d   :  { %777 = vmatmul.bf16.vlgmr.msra.gmra.mxu2 %v1723_v30  ;;  %948 = vmatpush.bf16.msrb.mxu1 %v1580_v61 }
  0x6e   :  { %790 = vmatmul.bf16.vlgmr.msra.gmra.mxu3 %v1725_v34  ;;  %v1566_v34 = vld [vmem:[%s1798_s3 + $0x8] sm:$0xff]  ;;  %1586 = vset.pattern.permute.xlu0 %v1645_v53 }
  0x6f   :  { %968 = vperm.xlu0 %1586, %v965_v52  }
  0x70   :  { %936 = vmatpush.bf16.msrb.mxu0 %v1571_v54  ;;  %v1587_v54 = vld [vmem:[%s1799_s4] ss:$0 sm:$0xff]  ;;  %s1646_s4 = smov [#allocation6]  }
  0x71   :  { %949 = vmatpush.bf16.msrb.mxu1 %v1579_v62  ;;  %s1007_s29 = sshll.u32 %s1646_s4, 4  ;;  %s1008_s29 = int_to_ptr.vmem [resolvable:$true] %s1007_s29 }
  0x74   :  { %937 = vmatpush.bf16.msrb.mxu0 %v1570_v55 }
  0x75   :  { %950 = vmatpush.bf16.msrb.mxu1 %v1578_v2 }
  0x78   :  { %938 = vmatpush.bf16.msrb.mxu0 %v1569_v56 }
  0x79   :  { %951 = vmatpush.bf16.msrb.mxu1 %v1577_v4 }
  0x7c   :  { %939 = vmatpush.bf16.msrb.mxu0 %v1568_v6 }
  0x7d   :  { %952 = vmatpush.bf16.msrb.mxu1 %v1576_v12 }
  0x80   :  { %940 = vmatpush.bf16.msrb.mxu0 %v1567_v18 }
  0x81   :  { %953 = vmatpush.bf16.msrb.mxu1 %v1575_v14 }
  0x84   :  { %941 = vmatpush.bf16.msrb.mxu0 %v1566_v34  ;;  %v964_v34 = vld [vmem:[%s1800_s5] sm:$0x1] }
  0x85   :  { %954 = vmatpush.bf16.msrb.mxu1 %v1574_v20 }
  0x88   :  { %942 = vmatpush.bf16.msrb.mxu0 %v1565_v59 }
  0x89   :  { %955 = vmatpush.bf16.msrb.mxu1 %v1573_v27 }
  0xa8   :  { %v648_v30 = vpop.f32.mrf.mxu0 }
  0xa9   :  { %v661_v58 = vpop.f32.mrf.mxu1  ;;  %v649_v3 = vadd.f32 %v648_v30, %v155_v5 }
  0xab   :  { %v662_v7 = vadd.f32 %v661_v58, %v649_v3 }
  0xb0   :  { %v650_v57 = vpop.f32.mrf.mxu0  ;;  %v674_v63 = vpop.f32.mrf.mxu2 }
  0xb1   :  { %v663_v0 = vpop.f32.mrf.mxu1  ;;  %v687_v1 = vpop.f32.mrf.mxu3  ;;  %v675_v10 = vadd.f32 %v674_v63, %v662_v7 }
  0xb3   :  { %v688_v11 = vadd.f32 %v687_v1, %v675_v10 }
  0xb8   :  { %v676_v8 = vpop.f32.mrf.mxu2 }
  0xb9   :  { %v689_v9 = vpop.f32.mrf.mxu3 }
  0xc8   :  { %v700_v13 = vpop.f32.mrf.mxu0 }
  0xc9   :  { %v701_v15 = vadd.f32 %v700_v13, %v688_v11  ;;  %v713_v16 = vpop.f32.mrf.mxu1 }
  0xcb   :  { %v714_v17 = vadd.f32 %v713_v16, %v701_v15 }
  0xcd   :  { %vm795_vm0 = vcmp.gt.f32.partialorder %v714_v17, 0.0  ;;  %v797_v19 = vmul.f32 0.01, %v714_v17 }
  0xcf   :  { %v799_v21 = vsel %vm795_vm0, %v714_v17, %v797_v19 }
  0xd0   :  { %v726_v22 = vpop.f32.mrf.mxu2  ;;  %v801_v23 = vpack.c.bf16 %v799_v21, %v799_v21  ;;  %v702_v25 = vpop.f32.mrf.mxu0 }
  0xd1   :  { %v739_v24 = vpop.f32.mrf.mxu3  ;;  %v715_v26 = vpop.f32.mrf.mxu1  ;;  %v727_v32 = vadd.f32 %v726_v22, %v156_v31 }
  0xd2   :  { %943 = vmatmul.bf16.vlgmr.msrb.gmra.mxu0 %v801_v23 }
  0xd3   :  { %v740_v33 = vadd.f32 %v739_v24, %v727_v32 }
  0xd8   :  { %v728_v28 = vpop.f32.mrf.mxu2 }
  0xd9   :  { %v741_v29 = vpop.f32.mrf.mxu3 }
  0xe1   :  { %v969_v59 = vpop.permute.xlu0 %968 }
  0xe2   :  { %v971_v60 = vperm.slane %v969_v59, 0 }
  0xe8   :  { %v752_v35 = vpop.f32.mrf.mxu0 }
  0xe9   :  { %v765_v36 = vpop.f32.mrf.mxu1  ;;  %v753_v37 = vadd.f32 %v752_v35, %v740_v33 }
  0xeb   :  { %v766_v38 = vadd.f32 %v765_v36, %v753_v37 }
  0xf0   :  { %v778_v39 = vpop.f32.mrf.mxu2  ;;  %v754_v42 = vpop.f32.mrf.mxu0 }
  0xf1   :  { %v779_v40 = vadd.f32 %v778_v39, %v766_v38  ;;  %v791_v41 = vpop.f32.mrf.mxu3  ;;  %v767_v43 = vpop.f32.mrf.mxu1 }
  0xf3   :  { %v792_v44 = vadd.f32 %v791_v41, %v779_v40 }
  0xf5   :  { %vm796_vm1 = vcmp.gt.f32.partialorder %v792_v44, 0.0  ;;  %v798_v45 = vmul.f32 0.01, %v792_v44 }
  0xf7   :  { %v800_v46 = vsel %vm796_vm1, %v792_v44, %v798_v45 }
  0xf8   :  { %v802_v47 = vpack.c.bf16 %v800_v46, %v800_v46  ;;  %v780_v48 = vpop.f32.mrf.mxu2 }
  0xf9   :  { %v793_v49 = vpop.f32.mrf.mxu3 }
  0xfa   :  { %956 = vmatmul.bf16.vlgmr.msrb.gmra.mxu1 %v802_v47 }
 0x14f   :  { %v944_v50 = vpop.f32.mrf.mxu0 }
 0x150   :  { %v945_v55 = vadd.f32 %v1587_v54, %v944_v50 }
 0x157   :  { %v946_v51 = vpop.f32.mrf.mxu0 }
 0x177   :  { %v957_v56 = vpop.f32.mrf.mxu1 }
 0x178   :  { %v958_v6 = vadd.f32 %v957_v56, %v945_v55 }
 0x17a   :  { %vm961_vm2 = vcmp.gt.f32.partialorder %v958_v6, 0.0  ;;  %v962_v18 = vmul.f32 0.01, %v958_v6 }
 0x17c   :  { %v963_v30 = vsel %vm961_vm2, %v958_v6, %v962_v18 }
 0x17d   :  { %1467 = vmatpush.xpose.msk.msrb.mxu2 %vm972_vm3, %v963_v30 }
 0x17f   :  { %v959_v58 = vpop.f32.mrf.mxu1 }
 0x180   :  { %1468 = vmatmul.msk.f32.vlgmr.msrb.gmra.mxu2 %vm972_vm3, %v964_v34 }
 0x203   :  { %v996_v57 = vpop.f32.mrf.mxu2 }
 0x204   :  { %v997_v61 = vadd.f32 %v996_v57, %v971_v60 }
 0x206   :  { %1588 = vtanh.f32 %v997_v61 }
 0x20c   :  { %v1589_v62 = vpop.eup %1588 }
 0x20d   :  { %1001 = vst.msk [vmem:[#allocation6] sm:$0x1] %vm1000_vm4, %v1589_v62 }
 0x20e   :  { %1012 = dma.vmem_to_hbm [thread:$0]  %s1008_s29, 16, %s1010_s9, [#allocation5]  }
 0x20f   :  { %1640 = dma.done.wait [#allocation5], 16  }
 0x210   :  { %1641 = vsyncadd [#allocation5], 4294967280 }
 0x211   :  { %1017 = vsyncpa [#allocation4], 1 }
 0x212   :  { %1018 = vsyncpa [#allocation5], 1 }

</bundles_post_ra>
